<compile_context>
chip_gen: v7x
topology: tpu7x:2x2x1
jax: 0.10.0
libtpu: 0.0.40
codegen_flags: <defaults>
</compile_context>

<pallas_src>
import numpy as np
import jax
import jax.numpy as jnp
from jax import lax
from jax.experimental import pallas as pl
from jax.experimental.pallas import tpu as pltpu

LEAKY_SLOPE = 0.001   # activation_param for InPlaceABN after conv1
BN_EPS = 1e-5


def basic_block_kernel(x_ref, w1_ref, b1_ref, w2_ref, b2_ref,
                       sw1_ref, sb1_ref, sw2_ref, sb2_ref, out_ref):
    NB, H, WC = x_ref.shape                        # lane-dense (batch, H, W*C)
    M = NB * H

    x3 = x_ref[...]                                # (NB, H, WC) f32
    x2 = x3.reshape(M, WC)

    # Per-batch row index over the flat M axis (m = n*H + h  ->  h = m % H).
    hid = lax.broadcasted_iota(jnp.int32, (M, WC), 0) % H
    top = hid == 0
    bot = hid == H - 1

    def shift3(a):
        """[row h-1 | row h | row h+1] along lanes, zero-padded at H edges."""
        up = jnp.where(top, 0.0, pltpu.roll(a, 1, axis=0))
        dn = jnp.where(bot, 0.0, pltpu.roll(a, M - 1, axis=0))
        return jnp.concatenate([up, a, dn], axis=-1)       # (M, 3*WC)

    # ---- conv1: one (M, 3*WC) x (3*WC, WC) MXU matmul (BN scale folded) ----
    a1 = shift3(x2).astype(jnp.bfloat16)
    y1 = jnp.dot(a1, w1_ref[...], preferred_element_type=jnp.float32)
    y1 = y1 + b1_ref[...]
    y1 = jnp.maximum(y1, LEAKY_SLOPE * y1)                 # leaky_relu(0.001)

    # ---- conv2: same structure, identity activation -------------------------
    a2 = shift3(y1).astype(jnp.bfloat16)
    y2 = jnp.dot(a2, w2_ref[...], preferred_element_type=jnp.float32)
    y2 = (y2 + b2_ref[...]).reshape(NB, H, WC)

    # ---- SE: GAP folded into fc1 weights (1/(H*W) + W tiling) ---------------
    pooled = jnp.sum(y2, axis=1).astype(jnp.bfloat16)      # (NB, WC)
    se = jnp.dot(pooled, sw1_ref[...],
                 preferred_element_type=jnp.float32) + sb1_ref[...]
    se = jnp.maximum(se, 0.0).astype(jnp.bfloat16)
    se = jnp.dot(se, sw2_ref[...],
                 preferred_element_type=jnp.float32) + sb2_ref[...]
    se = jax.nn.sigmoid(se)                                # (NB, WC) f32

    # ---- channel scale, residual add (unpadded x), ReLU ---------------------
    out_ref[...] = jnp.maximum(y2 * se[:, None, :] + x3, 0.0)


def _banded_conv_matrix(w_hwio, scale, W):
    """Fold per-channel BN scale into w (3,3,Cin,Cout) and lay it out as 3
    block-banded (W*Cin, W*Cout) matrices (one per kernel row dy) encoding
    the dx taps and the zero padding at the W boundary."""
    w = np.asarray(w_hwio) * np.asarray(scale).reshape(1, 1, 1, -1)
    _, _, cin, cout = w.shape
    B = np.zeros((3, W * cin, W * cout), np.float32)
    for dx in range(3):
        for wo in range(W):
            wi = wo + dx - 1
            if 0 <= wi < W:
                B[:, wi * cin:(wi + 1) * cin, wo * cout:(wo + 1) * cout] = w[:, dx]
    return B


def basic_block(x_nhwc, params):
    (w1, s1, b1, w2, s2, b2, sew1, seb1, sew2, seb2) = params
    N, H, W, Cin = x_nhwc.shape
    Cout = w1.shape[-1]
    assert Cin == Cout, "stride=1 / downsample=None requires inplanes == planes"
    WC = W * Cin

    # Host-side prep: stacked banded conv weights (bf16, BN scale folded,
    # row order [dy=0 | dy=1 | dy=2] matching the in-kernel lane concat),
    # lane-tiled BN biases, SE weights with GAP / W-tiling folded in.
    B1 = _banded_conv_matrix(w1, s1, W)                       # (3, WC, WC)
    B2 = _banded_conv_matrix(w2, s2, W)
    W1 = jnp.asarray(B1.reshape(3 * WC, WC), jnp.bfloat16)
    W2 = jnp.asarray(B2.reshape(3 * WC, WC), jnp.bfloat16)
    b1t = jnp.tile(b1, W).reshape(1, WC).astype(jnp.float32)
    b2t = jnp.tile(b2, W).reshape(1, WC).astype(jnp.float32)
    R = sew1.shape[1]
    sw1 = (jnp.tile(sew1, (W, 1)) / float(H * W)).astype(jnp.bfloat16)  # (WC, R)
    sb1 = seb1.reshape(1, R).astype(jnp.float32)
    sw2 = jnp.tile(sew2, (1, W)).astype(jnp.bfloat16)                   # (R, WC)
    sb2 = jnp.tile(seb2, W).reshape(1, WC).astype(jnp.float32)

    x_flat = x_nhwc.reshape(N, H, WC)                 # lane-dense NHWC view

    # Grid length >= 2: shards across v7x's two TensorCores and restores
    # input/output DMA / compute overlap on all generations.
    NB = N // 2 if (N >= 2 and N % 2 == 0) else N
    grid = (N // NB,)

    full2 = lambda b: (0, 0)
    grid_spec = pltpu.PrefetchScalarGridSpec(
        num_scalar_prefetch=0,
        grid=grid,
        in_specs=[
            pl.BlockSpec((NB, H, WC), lambda b: (b, 0, 0)),
            pl.BlockSpec(W1.shape, full2),
            pl.BlockSpec(b1t.shape, full2),
            pl.BlockSpec(W2.shape, full2),
            pl.BlockSpec(b2t.shape, full2),
            pl.BlockSpec(sw1.shape, full2),
            pl.BlockSpec(sb1.shape, full2),
            pl.BlockSpec(sw2.shape, full2),
            pl.BlockSpec(sb2.shape, full2),
        ],
        out_specs=pl.BlockSpec((NB, H, WC), lambda b: (b, 0, 0)),
    )
    out_flat = pl.pallas_call(
        basic_block_kernel,
        out_shape=jax.ShapeDtypeStruct((N, H, WC), jnp.float32),
        grid_spec=grid_spec,
        compiler_params=pltpu.CompilerParams(
            dimension_semantics=("parallel",),
            vmem_limit_bytes=32 * 1024 * 1024),
    )(x_flat, W1, b1t, W2, b2t, sw1, sb1, sw2, sb2)
    return out_flat.reshape(N, H, W, Cout)


def make_params(key, inplanes, planes):
    reduce_planes = max(planes // 4, 64)
    ks = jax.random.split(key, 16)

    def folded_bn(kg, kb, km, kv, c):
        gamma = 1.0 + 0.1 * jax.random.normal(kg, (c,), jnp.float32)
        beta = 0.1 * jax.random.normal(kb, (c,), jnp.float32)
        mean = 0.1 * jax.random.normal(km, (c,), jnp.float32)
        var = jnp.abs(jax.random.normal(kv, (c,), jnp.float32)) + 0.5
        inv = gamma / jnp.sqrt(var + BN_EPS)
        return inv, beta - mean * inv

    w1 = 0.1 * jax.random.normal(ks[0], (3, 3, inplanes, planes), jnp.float32)
    s1, b1 = folded_bn(ks[1], ks[2], ks[3], ks[4], planes)
    w2 = 0.1 * jax.random.normal(ks[5], (3, 3, planes, planes), jnp.float32)
    s2, b2 = folded_bn(ks[6], ks[7], ks[8], ks[9], planes)
    sew1 = 0.1 * jax.random.normal(ks[10], (planes, reduce_planes), jnp.float32)
    seb1 = 0.1 * jax.random.normal(ks[11], (reduce_planes,), jnp.float32)
    sew2 = 0.1 * jax.random.normal(ks[12], (reduce_planes, planes), jnp.float32)
    seb2 = 0.1 * jax.random.normal(ks[13], (planes,), jnp.float32)
    return (w1, s1, b1, w2, s2, b2, sew1, seb1, sew2, seb2)


def reference(x_nhwc, params):
    (w1, s1, b1, w2, s2, b2, sew1, seb1, sew2, seb2) = params
    dn = ('NHWC', 'HWIO', 'NHWC')
    y1 = lax.conv_general_dilated(x_nhwc, w1, (1, 1), 'SAME', dimension_numbers=dn)
    y1 = y1 * s1 + b1
    y1 = jnp.where(y1 > 0, y1, LEAKY_SLOPE * y1)
    y2 = lax.conv_general_dilated(y1, w2, (1, 1), 'SAME', dimension_numbers=dn)
    y2 = y2 * s2 + b2
    pooled = jnp.mean(y2, axis=(1, 2), keepdims=True)
    se = jnp.maximum(jnp.einsum('nxyc,cr->nxyr', pooled, sew1) + seb1, 0.0)
    se = jax.nn.sigmoid(jnp.einsum('nxyr,rc->nxyc', se, sew2) + seb2)
    return jnp.maximum(y2 * se + x_nhwc, 0.0)


if __name__ == "__main__":
    key = jax.random.PRNGKey(0)
    kx, kp = jax.random.split(key)
    # stride=1 / downsample=None requires inplanes == planes.
    # C=8, W=16 -> W*C = 128 lanes (lane-dense layout).
    N, C, H, W = 2, 8, 16, 16
    x_nchw = jax.random.normal(kx, (N, C, H, W), jnp.float32)   # PyTorch-style NCHW
    x_nhwc = jnp.transpose(x_nchw, (0, 2, 3, 1))
    params = make_params(kp, C, C)

    out = jax.block_until_ready(basic_block(x_nhwc, params))
    ref = reference(x_nhwc, params)

    assert out.shape == (N, H, W, C) and out.dtype == jnp.float32
    max_err = float(jnp.max(jnp.abs(out - ref)))
    # bf16 MXU operands with f32 accumulation -> relaxed tolerance.
    assert jnp.allclose(out, ref, rtol=2e-2, atol=2e-2), max_err
    print("KERNEL_OK")
</pallas_src>

<mosaic_0001>
module attributes {stable_mosaic.version = 11 : i64} {
  func.func @basic_block_kernel(%arg0: i32, %arg1: memref<1x16x128xf32, #tpu.memory_space<vmem>>, %arg2: memref<384x128xbf16, #tpu.memory_space<vmem>>, %arg3: memref<1x128xf32, #tpu.memory_space<vmem>>, %arg4: memref<384x128xbf16, #tpu.memory_space<vmem>>, %arg5: memref<1x128xf32, #tpu.memory_space<vmem>>, %arg6: memref<128x64xbf16, #tpu.memory_space<vmem>>, %arg7: memref<1x64xf32, #tpu.memory_space<vmem>>, %arg8: memref<64x128xbf16, #tpu.memory_space<vmem>>, %arg9: memref<1x128xf32, #tpu.memory_space<vmem>>, %arg10: memref<1x16x128xf32, #tpu.memory_space<vmem>>) attributes {dimension_semantics = [#tpu.dimension_semantics<parallel>], iteration_bounds = array<i64: 2>, scalar_prefetch = 0 : i64, scratch_operands = 0 : i64, tpu.core_type = #tpu.core_type<tc>, window_params = [{transform_indices = @transform_0, window_bounds = array<i64: 1, 16, 128>}, {pipeline_mode = #tpu.pipeline_mode<synchronous>, transform_indices = @transform_1, window_bounds = array<i64: 384, 128>}, {pipeline_mode = #tpu.pipeline_mode<synchronous>, transform_indices = @transform_2, window_bounds = array<i64: 1, 128>}, {pipeline_mode = #tpu.pipeline_mode<synchronous>, transform_indices = @transform_3, window_bounds = array<i64: 384, 128>}, {pipeline_mode = #tpu.pipeline_mode<synchronous>, transform_indices = @transform_4, window_bounds = array<i64: 1, 128>}, {pipeline_mode = #tpu.pipeline_mode<synchronous>, transform_indices = @transform_5, window_bounds = array<i64: 128, 64>}, {pipeline_mode = #tpu.pipeline_mode<synchronous>, transform_indices = @transform_6, window_bounds = array<i64: 1, 64>}, {pipeline_mode = #tpu.pipeline_mode<synchronous>, transform_indices = @transform_7, window_bounds = array<i64: 64, 128>}, {pipeline_mode = #tpu.pipeline_mode<synchronous>, transform_indices = @transform_8, window_bounds = array<i64: 1, 128>}, {transform_indices = @transform_9, window_bounds = array<i64: 1, 16, 128>}]} {
    %c0 = arith.constant 0 : index
    %c0_0 = arith.constant 0 : index
    %c0_1 = arith.constant 0 : index
    %0 = vector.load %arg1[%c0, %c0_0, %c0_1] : memref<1x16x128xf32, #tpu.memory_space<vmem>>, vector<1x16x128xf32>
    %1 = vector.shape_cast %0 : vector<1x16x128xf32> to vector<16x128xf32>
    %2 = tpu.iota {dimensions = array<i32: 0>} : vector<16x128xi32>
    %c16_i32 = arith.constant 16 : i32
    %c0_i32 = arith.constant 0 : i32
    %3 = arith.cmpi eq, %c16_i32, %c0_i32 : i32
    %c1_i32 = arith.constant 1 : i32
    %4 = arith.select %3, %c1_i32, %c16_i32 : i32
    %5 = vector.broadcast %4 : i32 to vector<16x128xi32>
    %6 = arith.remsi %2, %5 : vector<16x128xi32>
    %c0_i32_2 = arith.constant 0 : i32
    %7 = vector.broadcast %c0_i32_2 : i32 to vector<16x128xi32>
    %8 = arith.cmpi ne, %6, %7 : vector<16x128xi32>
    %c0_i32_3 = arith.constant 0 : i32
    %9 = vector.broadcast %c0_i32_3 : i32 to vector<16x128xi32>
    %10 = arith.cmpi slt, %6, %9 : vector<16x128xi32>
    %c0_i32_4 = arith.constant 0 : i32
    %11 = arith.cmpi slt, %4, %c0_i32_4 : i32
    %12 = vector.broadcast %11 : i1 to vector<16x128xi1>
    %13 = vector.broadcast %12 : vector<16x128xi1> to vector<16x128xi1>
    %14 = arith.xori %10, %13 : vector<16x128xi1>
    %15 = arith.andi %14, %8 : vector<16x128xi1>
    %16 = vector.broadcast %4 : i32 to vector<16x128xi32>
    %17 = arith.addi %6, %16 : vector<16x128xi32>
    %18 = arith.select %15, %17, %6 : vector<16x128xi1>, vector<16x128xi32>
    %c0_i32_5 = arith.constant 0 : i32
    %19 = vector.broadcast %c0_i32_5 : i32 to vector<16x128xi32>
    %20 = arith.cmpi eq, %18, %19 : vector<16x128xi32>
    %c15_i32 = arith.constant 15 : i32
    %21 = vector.broadcast %c15_i32 : i32 to vector<16x128xi32>
    %22 = arith.cmpi eq, %18, %21 : vector<16x128xi32>
    %c1_i32_6 = arith.constant 1 : i32
    %23 = tpu.dynamic_rotate %1 by %c1_i32_6 dim 0 : vector<16x128xf32>, i32 -> vector<16x128xf32>
    %cst = arith.constant 0.000000e+00 : f32
    %24 = vector.broadcast %cst : f32 to vector<16x128xf32>
    %25 = arith.select %20, %24, %23 : vector<16x128xi1>, vector<16x128xf32>
    %c15_i32_7 = arith.constant 15 : i32
    %26 = tpu.dynamic_rotate %1 by %c15_i32_7 dim 0 : vector<16x128xf32>, i32 -> vector<16x128xf32>
    %cst_8 = arith.constant 0.000000e+00 : f32
    %27 = vector.broadcast %cst_8 : f32 to vector<16x128xf32>
    %28 = arith.select %22, %27, %26 : vector<16x128xi1>, vector<16x128xf32>
    %29 = tpu.concatenate %25, %1, %28 in 1 : vector<16x128xf32>, vector<16x128xf32>, vector<16x128xf32> -> vector<16x384xf32>
    %30 = arith.truncf %29 : vector<16x384xf32> to vector<16x384xbf16>
    %c0_9 = arith.constant 0 : index
    %c0_10 = arith.constant 0 : index
    %31 = vector.load %arg2[%c0_9, %c0_10] : memref<384x128xbf16, #tpu.memory_space<vmem>>, vector<384x128xbf16>
    %cst_11 = arith.constant dense<0.000000e+00> : vector<16x128xf32>
    %32 = tpu.matmul %30, %31, %cst_11 {dimension_numbers = #tpu.dot_dimension_numbers<[1], [0], [0], [1], [0, 0, 1, 1], [], []>} : vector<16x384xbf16>, vector<384x128xbf16>, vector<16x128xf32> -> vector<16x128xf32>
    %c0_12 = arith.constant 0 : index
    %c0_13 = arith.constant 0 : index
    %33 = vector.load %arg3[%c0_12, %c0_13] : memref<1x128xf32, #tpu.memory_space<vmem>>, vector<1x128xf32>
    %34 = vector.broadcast %33 : vector<1x128xf32> to vector<16x128xf32>
    %35 = arith.addf %32, %34 : vector<16x128xf32>
    %cst_14 = arith.constant 1.000000e-03 : f32
    %36 = vector.broadcast %cst_14 : f32 to vector<16x128xf32>
    %37 = arith.mulf %36, %35 : vector<16x128xf32>
    %38 = arith.maximumf %35, %37 : vector<16x128xf32>
    %c1_i32_15 = arith.constant 1 : i32
    %39 = tpu.dynamic_rotate %38 by %c1_i32_15 dim 0 : vector<16x128xf32>, i32 -> vector<16x128xf32>
    %cst_16 = arith.constant 0.000000e+00 : f32
    %40 = vector.broadcast %cst_16 : f32 to vector<16x128xf32>
    %41 = arith.select %20, %40, %39 : vector<16x128xi1>, vector<16x128xf32>
    %c15_i32_17 = arith.constant 15 : i32
    %42 = tpu.dynamic_rotate %38 by %c15_i32_17 dim 0 : vector<16x128xf32>, i32 -> vector<16x128xf32>
    %cst_18 = arith.constant 0.000000e+00 : f32
    %43 = vector.broadcast %cst_18 : f32 to vector<16x128xf32>
    %44 = arith.select %22, %43, %42 : vector<16x128xi1>, vector<16x128xf32>
    %45 = tpu.concatenate %41, %38, %44 in 1 : vector<16x128xf32>, vector<16x128xf32>, vector<16x128xf32> -> vector<16x384xf32>
    %46 = arith.truncf %45 : vector<16x384xf32> to vector<16x384xbf16>
    %c0_19 = arith.constant 0 : index
    %c0_20 = arith.constant 0 : index
    %47 = vector.load %arg4[%c0_19, %c0_20] : memref<384x128xbf16, #tpu.memory_space<vmem>>, vector<384x128xbf16>
    %cst_21 = arith.constant dense<0.000000e+00> : vector<16x128xf32>
    %48 = tpu.matmul %46, %47, %cst_21 {dimension_numbers = #tpu.dot_dimension_numbers<[1], [0], [0], [1], [0, 0, 1, 1], [], []>} : vector<16x384xbf16>, vector<384x128xbf16>, vector<16x128xf32> -> vector<16x128xf32>
    %c0_22 = arith.constant 0 : index
    %c0_23 = arith.constant 0 : index
    %49 = vector.load %arg5[%c0_22, %c0_23] : memref<1x128xf32, #tpu.memory_space<vmem>>, vector<1x128xf32>
    %50 = vector.broadcast %49 : vector<1x128xf32> to vector<16x128xf32>
    %51 = arith.addf %48, %50 : vector<16x128xf32>
    %52 = vector.shape_cast %51 : vector<16x128xf32> to vector<1x16x128xf32>
    %cst_24 = arith.constant dense<0.000000e+00> : vector<1x128xf32>
    %53 = vector.multi_reduction <add>, %52, %cst_24 [1] : vector<1x16x128xf32> to vector<1x128xf32>
    %54 = arith.truncf %53 : vector<1x128xf32> to vector<1x128xbf16>
    %c0_25 = arith.constant 0 : index
    %c0_26 = arith.constant 0 : index
    %55 = vector.load %arg6[%c0_25, %c0_26] : memref<128x64xbf16, #tpu.memory_space<vmem>>, vector<128x64xbf16>
    %cst_27 = arith.constant dense<0.000000e+00> : vector<1x64xf32>
    %56 = tpu.matmul %54, %55, %cst_27 {dimension_numbers = #tpu.dot_dimension_numbers<[1], [0], [0], [1], [0, 0, 1, 1], [], []>} : vector<1x128xbf16>, vector<128x64xbf16>, vector<1x64xf32> -> vector<1x64xf32>
    %c0_28 = arith.constant 0 : index
    %c0_29 = arith.constant 0 : index
    %57 = vector.load %arg7[%c0_28, %c0_29] : memref<1x64xf32, #tpu.memory_space<vmem>>, vector<1x64xf32>
    %58 = arith.addf %56, %57 : vector<1x64xf32>
    %cst_30 = arith.constant 0.000000e+00 : f32
    %59 = vector.broadcast %cst_30 : f32 to vector<1x64xf32>
    %60 = arith.maximumf %58, %59 : vector<1x64xf32>
    %61 = arith.truncf %60 : vector<1x64xf32> to vector<1x64xbf16>
    %c0_31 = arith.constant 0 : index
    %c0_32 = arith.constant 0 : index
    %62 = vector.load %arg8[%c0_31, %c0_32] : memref<64x128xbf16, #tpu.memory_space<vmem>>, vector<64x128xbf16>
    %cst_33 = arith.constant dense<0.000000e+00> : vector<1x128xf32>
    %63 = tpu.matmul %61, %62, %cst_33 {dimension_numbers = #tpu.dot_dimension_numbers<[1], [0], [0], [1], [0, 0, 1, 1], [], []>} : vector<1x64xbf16>, vector<64x128xbf16>, vector<1x128xf32> -> vector<1x128xf32>
    %c0_34 = arith.constant 0 : index
    %c0_35 = arith.constant 0 : index
    %64 = vector.load %arg9[%c0_34, %c0_35] : memref<1x128xf32, #tpu.memory_space<vmem>>, vector<1x128xf32>
    %65 = arith.addf %63, %64 : vector<1x128xf32>
    %66 = arith.negf %65 : vector<1x128xf32>
    %67 = math.exp %66 : vector<1x128xf32>
    %cst_36 = arith.constant 1.000000e+00 : f32
    %68 = vector.broadcast %cst_36 : f32 to vector<1x128xf32>
    %69 = arith.addf %68, %67 : vector<1x128xf32>
    %70 = arith.divf %68, %69 : vector<1x128xf32>
    %71 = vector.shape_cast %70 : vector<1x128xf32> to vector<1x1x128xf32>
    %72 = vector.broadcast %71 : vector<1x1x128xf32> to vector<1x16x128xf32>
    %73 = arith.mulf %52, %72 : vector<1x16x128xf32>
    %74 = arith.addf %73, %0 : vector<1x16x128xf32>
    %cst_37 = arith.constant 0.000000e+00 : f32
    %75 = vector.broadcast %cst_37 : f32 to vector<1x16x128xf32>
    %76 = arith.maximumf %74, %75 : vector<1x16x128xf32>
    %c0_38 = arith.constant 0 : index
    %c0_39 = arith.constant 0 : index
    %c0_40 = arith.constant 0 : index
    %77 = vector.load %arg10[%c0_38, %c0_39, %c0_40] : memref<1x16x128xf32, #tpu.memory_space<vmem>>, vector<1x16x128xf32>
    tpu.vector_store %arg10[%c0_38, %c0_39, %c0_40], %76 {strides = array<i32>} : memref<1x16x128xf32, #tpu.memory_space<vmem>>, vector<1x16x128xf32>,
    return
  }
  func.func @transform_0(%arg0: i32) -> (i32, i32, i32) {
    %c0_i32 = arith.constant 0 : i32
    %c0_i32_0 = arith.constant 0 : i32
    %c0_i32_1 = arith.constant 0 : i32
    return %arg0, %c0_i32, %c0_i32_0 : i32, i32, i32
  }
  func.func @transform_1(%arg0: i32) -> (i32, i32) {
    %c0_i32 = arith.constant 0 : i32
    %c0_i32_0 = arith.constant 0 : i32
    %c0_i32_1 = arith.constant 0 : i32
    return %c0_i32, %c0_i32_0 : i32, i32
  }
  func.func @transform_2(%arg0: i32) -> (i32, i32) {
    %c0_i32 = arith.constant 0 : i32
    %c0_i32_0 = arith.constant 0 : i32
    %c0_i32_1 = arith.constant 0 : i32
    return %c0_i32, %c0_i32_0 : i32, i32
  }
  func.func @transform_3(%arg0: i32) -> (i32, i32) {
    %c0_i32 = arith.constant 0 : i32
    %c0_i32_0 = arith.constant 0 : i32
    %c0_i32_1 = arith.constant 0 : i32
    return %c0_i32, %c0_i32_0 : i32, i32
  }
  func.func @transform_4(%arg0: i32) -> (i32, i32) {
    %c0_i32 = arith.constant 0 : i32
    %c0_i32_0 = arith.constant 0 : i32
    %c0_i32_1 = arith.constant 0 : i32
    return %c0_i32, %c0_i32_0 : i32, i32
  }
  func.func @transform_5(%arg0: i32) -> (i32, i32) {
    %c0_i32 = arith.constant 0 : i32
    %c0_i32_0 = arith.constant 0 : i32
    %c0_i32_1 = arith.constant 0 : i32
    return %c0_i32, %c0_i32_0 : i32, i32
  }
  func.func @transform_6(%arg0: i32) -> (i32, i32) {
    %c0_i32 = arith.constant 0 : i32
    %c0_i32_0 = arith.constant 0 : i32
    %c0_i32_1 = arith.constant 0 : i32
    return %c0_i32, %c0_i32_0 : i32, i32
  }
  func.func @transform_7(%arg0: i32) -> (i32, i32) {
    %c0_i32 = arith.constant 0 : i32
    %c0_i32_0 = arith.constant 0 : i32
    %c0_i32_1 = arith.constant 0 : i32
    return %c0_i32, %c0_i32_0 : i32, i32
  }
  func.func @transform_8(%arg0: i32) -> (i32, i32) {
    %c0_i32 = arith.constant 0 : i32
    %c0_i32_0 = arith.constant 0 : i32
    %c0_i32_1 = arith.constant 0 : i32
    return %c0_i32, %c0_i32_0 : i32, i32
  }
  func.func @transform_9(%arg0: i32) -> (i32, i32, i32) {
    %c0_i32 = arith.constant 0 : i32
    %c0_i32_0 = arith.constant 0 : i32
    %c0_i32_1 = arith.constant 0 : i32
    return %arg0, %c0_i32, %c0_i32_0 : i32, i32, i32
  }
}

</mosaic_0001>

<bundles_post_ra>
// kernel: tpu_custom_call.1
= control target key start
LH: loop header
LB: loop body
LE: loop exit
PB: predicated region body
PF: predicated region fallthrough
CT: control target
= control target key end

     0   :  { %14 = vsyncpa [#allocation3], 0  ;;  %s2178_s0 = inlined_call_operand.vmem [shape: f32[2,16,128], index: 0, kind: input, shape index: {}]   ;;  %s2179_s1 = inlined_call_operand.hbm [shape: bf16[384,128], index: 1, kind: input, shape index: {}]   ;;  %s2180_s2 = inlined_call_operand.vmem [shape: f32[1,128], index: 2, kind: input, shape index: {}]   ;;  %s2181_s3 = inlined_call_operand.hbm [shape: bf16[384,128], index: 3, kind: input, shape index: {}]   ;;  %s2182_s4 = inlined_call_operand.vmem [shape: f32[1,128], index: 4, kind: input, shape index: {}]   ;;  %s2183_s5 = inlined_call_operand.vmem [shape: bf16[128,64], index: 5, kind: input, shape index: {}]   ;;  %s2184_s6 = inlined_call_operand.vmem [shape: f32[1,64], index: 6, kind: input, shape index: {}]   ;;  %s2185_s7 = inlined_call_operand.vmem [shape: bf16[64,128], index: 7, kind: input, shape index: {}]   ;;  %s2186_s8 = inlined_call_operand.vmem [shape: f32[1,128], index: 8, kind: input, shape index: {}]   ;;  %s2187_s9 = inlined_call_operand.hbm [shape: f32[2,16,128], index: 9, kind: output, shape index: {}]  }
   0x1   :  { %15 = vsyncpa [#allocation6], 0 }
   0x2   :  { %16 = vsyncpa [#allocation4], 0 }
   0x3   :  { %18 = vsyncpa [#allocation4 + $0x1], 0  ;;  %s1868_s30 = smov 0   ;;  %s1870_s10 = smov 0  }
   0x4   :  { %s1872_s11 = smov 0   ;;  %s1874_s12 = smov 0  }
   0x5 LB: > { %2194 = sst [smem:[#allocation11_spill]] %s1802_s11  ;;  %s1889_s13 = sadd.s32 4294967295, %s1806_s12   ;;  %s1806_s12 = sphi %s1874_s12, %s2212_s12   ;;  %s1802_s11 = sphi %s1872_s11, %s2214_s11   ;;  %s1798_s10 = sphi %s1870_s10, %s2216_s10   ;;  %s1794_s30 = sphi %s1868_s30, %s2215_s30  }
   0x6   : > { %s1301_s14 = sadd.s32 4294967294, %s1806_s12   ;;  %s1893_s15 = sadd.s32 1, %s1806_s12  }
   0x7   : > { %2195 = sst [smem:[#allocation12_spill]] %s1893_s15  ;;  %s225_s16 = sadd.s32 1, %s1802_s11 }
   0x8   : > { %s222_s17 = ssub.s32 %s1806_s12, %s1893_s15  ;;  %p235_p0 = scmp.ne.s32.totalorder %s1802_s11, %s1798_s10 }
   0x9   : > { %p223_p1 = scmp.eq.s32.totalorder %s222_s17, 0  ;;  %p236_p2 = scmp.eq.s32.totalorder %s1889_s13, 1 }
   0xa   : > { %p241_p3 = scmp.ne.s32.totalorder %s1798_s10, %s1794_s30  ;;  %p242_p4 = scmp.eq.s32.totalorder %s1301_s14, 1 }
   0xb   : > { %s1904_s18 = scalar_select %p223_p1, %s1802_s11, %s225_s16  }
   0xc   : > { %p1906_p5 = por %p236_p2, %p235_p0  ;;  %p1910_p6 = por %p242_p4, %p241_p3 }
   0xd   : > { %2196 = sst [smem:[#allocation13_spill]] %s1904_s18  ;;  %p1302_p7 = scmp.ge.s32.totalorder %s1806_s12, 1 }
   0xe   : > { %s2197_s19 = scalar_select %p1906_p5, 1, 0 }
   0xf   : > { %s2198_s20 = scalar_select %p1910_p6, 1, 0 }
  0x10   : > { %p249_p8 = scmp.lt.s32.totalorder %s1806_s12, 3  ;;  %p2188_p9 = scmp.eq.s32.totalorder %s1889_s13, 0 }
  0x11   : > { %s1808_s22 = smov [#allocation2]   ;;  %s1809_s25 = smov [#allocation5]  }
  0x12   : > { %p1917_p10 = pnand %p1302_p7, %p249_p8  ;;  %s261_s23 = sshll.u32 %s1808_s22, 4  ;;  %s262_s23 = int_to_ptr.vmem [resolvable:$true] %s261_s23 }
  0x13   : > { %s277_s26 = sshll.u32 %s1809_s25, 4  ;;  %s1680_s29 = scalar_lea.hbm %s2179_s1, 3072  ;;  %s1929_s26 = int_to_ptr.vmem [resolvable:$true] %s277_s26 }
  0x14   : > { %s2199_s21 = scalar_select %p1917_p10, 1, 0 }
  0x15   : > { %p1559_p11 = pneg %p1917_p10  ;;  %p1681_p13 = scmp.ne.s32.totalorder %s2179_s1, %s1680_s29 }
  0x16   : > { %p1687_p3 = scmp.lt.u32.totalorder %s1680_s29, %s2179_s1 }
  0x17   : > { %p1925_p12 = pnand %p2188_p9, %p1559_p11 }
  0x19   : > { %p1682_p0 = pneg %p1925_p12 }
  0x1b   : > { %p1683_p1 = pnand %p1682_p0, %p1681_p13 }
  0x1d   : > { %p1684_p2 = pneg %p1683_p1 }
  0x1f   : > { %p1689_p4 = pnand %p1687_p3, %p1684_p2 }
  0x21   : > { %1692 = shalt.err (!%p1689_p4)
}
  0x22   : > { %s1693_s25 = scalar_lea.vmem %s262_s23, 3072  ;;  %p1701_p9 = scmp.lt.s32.totalorder %s262_s23, %s262_s23 }
  0x23   : > { %p1694_p7 = scmp.ne.s32.totalorder %s262_s23, %s1693_s25  ;;  %p1702_p6 = scmp.lt.s32.totalorder %s1693_s25, %s1693_s25 }
  0x25   : > { %p1696_p8 = pnand %p1694_p7, %p1682_p0  ;;  %p1703_p5 = por %p1702_p6, %p1701_p9 }
  0x27   : > { %p1697_p11 = pneg %p1696_p8 }
  0x29   : > { %p1704_p10 = pnand %p1703_p5, %p1697_p11 }
  0x2b   : > { %1707 = shalt.err (!%p1704_p10)
}
  0x2c   : > { %s1810_s27 = smov 64   ;;  %s1811_s28 = smov 4  }
  0x2d   : > { %1562 = dma.hbm_to_vmem [thread:$0]  (!%p1925_p12), %s2179_s1, 3072, %s262_s23, [#allocation3], %s1810_s27, %s1810_s27, %s1811_s28  }
  0x2e   : > { %s1708_s22 = scalar_lea.hbm %s2181_s3, 3072 }
  0x2f   : > { %p1709_p13 = scmp.ne.s32.totalorder %s2181_s3, %s1708_s22  ;;  %p1715_p9 = scmp.lt.u32.totalorder %s1708_s22, %s2181_s3 }
  0x31   : > { %p1711_p5 = pnand %p1709_p13, %p1682_p0 }
  0x33   : > { %p1712_p6 = pneg %p1711_p5 }
  0x35   : > { %p1717_p10 = pnand %p1715_p9, %p1712_p6 }
  0x37   : > { %1720 = shalt.err (!%p1717_p10)
}
  0x38   : > { %s1721_s23 = scalar_lea.vmem %s1929_s26, 3072  ;;  %p1729_p4 = scmp.lt.s32.totalorder %s1929_s26, %s1929_s26 }
  0x39   : > { %p1722_p1 = scmp.ne.s32.totalorder %s1929_s26, %s1721_s23  ;;  %p1730_p7 = scmp.lt.s32.totalorder %s1721_s23, %s1721_s23 }
  0x3b   : > { %p1724_p2 = pnand %p1722_p1, %p1682_p0  ;;  %p1731_p8 = por %p1730_p7, %p1729_p4 }
  0x3d   : > { %p1725_p3 = pneg %p1724_p2 }
  0x3f   : > { %p1732_p11 = pnand %p1731_p8, %p1725_p3 }
  0x41   : > { %1735 = shalt.err (!%p1732_p11)
}
  0x42   : > { %1565 = dma.hbm_to_vmem [thread:$0]  (!%p1925_p12), %s2181_s3, 3072, %s1929_s26, [#allocation6], %s1810_s27, %s1810_s27, %s1811_s28  }
  0x43   : > { %p2201_p13 = scmp.ne.s32.totalorder %s2199_s21, 0 }
  0x44   : > { %p2202_p5 = scmp.eq.s32.totalorder (!%p2201_p13), %s1889_s13, 0 }
  0x45   : > { %316 = sbr.rel (%p2201_p13) target bundleno = 1063 (0x427), region = 56 }
  0x4c   : > { %1781 = dma.done.wait (%p2202_p5), [#allocation3], 3072   ;;  %p2203_p0 = pmov %p2202_p5 }
  0x4e   : > { %1783 = vsyncadd (%p2203_p0), [#allocation3], 4294964224  ;;  %p2204_p6 = pmov %p2203_p0 }
  0x4f   : > { %p2205_p9 = pmov %p2203_p0 }
  0x50   : > { %1785 = dma.done.wait (%p2204_p6), [#allocation6], 3072  }
  0x51   : > { %1787 = vsyncadd (%p2205_p9), [#allocation6], 4294964224  ;;  %v1812_v0 = vmov 0.0   ;;  %vm1813_vm0 = vmmov 0   ;;  %v1616_v1 = vld [vmem:[#allocation2 + $0x40] sm:$0xff]   ;;  %v1619_v4 = vld [vmem:[#allocation2 + $0x48] sm:$0xff]   ;;  %v364_v12 = vlaneseq }
  0x52   : > { %1477 = vmatprep.subr.bf16.mxu1 %v1812_v0  ;;  %1493 = vmatprep.mubr.msk.bf16.mxu1 %vm1813_vm0, %v1812_v0  ;;  %v1617_v2 = vld [vmem:[#allocation2] sm:$0xff]   ;;  %v1620_v5 = vld [vmem:[#allocation2 + $0x8] sm:$0xff]   ;;  %v1622_v7 = vld [vmem:[#allocation2 + $0x50] sm:$0xff]   ;;  %p356_p12 = scmp.lt.s32.totalorder %s1889_s13, 1  ;;  %vm1814_vm4 = vmmov 1   ;;  %vm1141_vm8 = vcmask 523264  }
  0x53   : > { %1401 = vmatprep.subr.bf16.mxu0 %v1616_v1  ;;  %v1618_v3 = vld [vmem:[#allocation2 + $0x80] sm:$0xff]   ;;  %v1621_v6 = vld [vmem:[#allocation2 + $0x88] sm:$0xff]   ;;  %v1623_v8 = vld [vmem:[#allocation2 + $0x10] sm:$0xff]   ;;  %v1996_v16 = vshrl.u32 %v364_v12, 7  ;;  %s353_s14 = sand.u32 1, %s1798_s10   ;;  %s1398_s17 = sshll.u32 %s1889_s13, 8 }
  0x54   : > { %1402 = vmatpush3.bf16.msra.mxu0 %v1617_v2  ;;  %1478 = vmatpush3.bf16.msra.mxu1 %v1618_v3  ;;  %v1624_v9 = vld [vmem:[#allocation2 + $0x90] sm:$0xff]   ;;  %v1625_v10 = vld [vmem:[#allocation2 + $0x58] sm:$0xff]   ;;  %v1628_v14 = vld [vmem:[#allocation2 + $0x60] sm:$0xff]   ;;  %s357_s18 = scalar_select %p356_p12, %s1889_s13, 1 }
  0x55   : > { %1403 = vmatprep.subr.bf16.mxu0 %v1619_v4  ;;  %1479 = vmatprep.subr.bf16.mxu1 %v1812_v0  ;;  %v1626_v11 = vld [vmem:[#allocation2 + $0x18] sm:$0xff]   ;;  %v1629_v15 = vld [vmem:[#allocation2 + $0x20] sm:$0xff]   ;;  %v1631_v18 = vld [vmem:[#allocation2 + $0x68] sm:$0xff]   ;;  %v366_v20 = vadd.s32 8, %v1996_v16  ;;  %v371_v22 = vand.u32 15, %v1996_v16  ;;  %vm397_vm1 = vcmp.lt.s32.totalorder %v1996_v16, 1  ;;  %s2133_s15 = scalar_lea.hbm %s2187_s9, %s1398_s17 }
  0x56   : > { %v1627_v13 = vld [vmem:[#allocation2 + $0x98] sm:$0xff]   ;;  %v1630_v17 = vld [vmem:[#allocation2 + $0xa0] sm:$0xff]   ;;  %s1397_s21 = sshll.u32 %s357_s18, 4  ;;  %v1632_v19 = vld [vmem:[#allocation2 + $0x28] sm:$0xff]   ;;  %vm404_vm3 = vcmp.lt.s32.totalorder %v1996_v16, 7  ;;  %s1309_s16 = sshll.u32 %s353_s14, 4 }
  0x57   : > { %v1633_v21 = vld [vmem:[#allocation2 + $0xa8] sm:$0xff]   ;;  %v1634_v23 = vld [vmem:[#allocation2 + $0x70] sm:$0xff]   ;;  %s360_s27 = scalar_lea.vmem %s2178_s0, %s1397_s21  ;;  %v1637_v26 = vld [vmem:[#allocation2 + $0x78] sm:$0xff]   ;;  %v378_v27 = vand.u32 15, %v366_v20  ;;  %vm1399_vm2 = vcmp.ne.s32.totalorder %v371_v22, 0  ;;  %s355_s22 = scalar_lea.vmem [#allocation7], %s1309_s16 }
  0x58   : > { %1404 = vmatpush3.bf16.msra.mxu0 %v1620_v5  ;;  %1480 = vmatpush3.bf16.msra.mxu1 %v1621_v6  ;;  %v1635_v24 = vld [vmem:[#allocation2 + $0x30] sm:$0xff]   ;;  %v2005_v28 = vld [vmem:[%s360_s27] sm:$0xff]  ;;  %v2007_v29 = vld [vmem:[%s360_s27 + $0x8] sm:$0xff]  ;;  %s1217_s25 = sshll.u32 %s355_s22, 4  ;;  %s2137_s13 = scalar_lea.sflag [#allocation4], %s353_s14  ;;  %s2135_s25 = int_to_ptr.vmem [resolvable:$true] %s1217_s25 }
  0x59   : > { %1405 = vmatprep.subr.bf16.mxu0 %v1622_v7  ;;  %1481 = vmatprep.subr.bf16.mxu1 %v1812_v0  ;;  %v1636_v25 = vld [vmem:[#allocation2 + $0xb0] sm:$0xff]   ;;  %v395_v30 = vrot.slane %v2005_v28, 7  ;;  %v396_v31 = vrot.slane %v2007_v29, 7  ;;  %v402_v32 = vrot.slane %v2005_v28, 1  ;;  %v403_v33 = vrot.slane %v2007_v29, 1  ;;  %v1638_v34 = vld [vmem:[#allocation2 + $0x38] sm:$0xff]   ;;  %vm2018_vm5 = vmpackc.low %vm1814_vm4, %vm1399_vm2 }
  0x5a   : > { %v410_v35 = vpack.c.bf16 %v2007_v29, %v2005_v28  ;;  %vm1400_vm6 = vcmp.ne.s32.totalorder %v378_v27, 15  ;;  %v1639_v37 = vld [vmem:[#allocation2 + $0xb8] sm:$0xff]   ;;  %v1640_v42 = vld [vmem:[#allocation5 + $0x40] sm:$0xff]   ;;  %v1643_v48 = vld [vmem:[#allocation5 + $0x48] sm:$0xff]   ;;  %s1736_s18 = scalar_lea.vmem %s2135_s25, 256  ;;  %p2210_p1 = scmp.ne.s32.totalorder %s2197_s19, 0 }
  0x5b   : > { %v398_v38 = vsel %vm397_vm1, %v395_v30, %v396_v31  ;;  %v399_v39 = vsel %vm397_vm1, %v396_v31, %v395_v30  ;;  %v405_v40 = vsel %vm404_vm3, %v402_v32, %v403_v33  ;;  %v406_v41 = vsel %vm404_vm3, %v403_v33, %v402_v32  ;;  %vm2031_vm7 = vmpackc.low %vm1400_vm6, %vm1814_vm4  ;;  %v1641_v45 = vld [vmem:[#allocation5] sm:$0xff]   ;;  %v1644_v49 = vld [vmem:[#allocation5 + $0x8] sm:$0xff]   ;;  %p1737_p10 = scmp.ne.s32.totalorder %s2135_s25, %s1736_s18  ;;  %s1815_s21 = smov [#allocation7]  }
  0x5c   : > { %1406 = vmatpush3.bf16.msra.mxu0 %v1623_v8  ;;  %1482 = vmatpush3.bf16.msra.mxu1 %v1624_v9  ;;  %v1339_v44 = vpack.c.bf16 %v398_v38, %v399_v39  ;;  %v1343_v46 = vpack.c.bf16 %v406_v41, %v405_v40  ;;  %v1642_v47 = vld [vmem:[#allocation5 + $0x80] sm:$0xff]   ;;  %v1645_v50 = vld [vmem:[#allocation5 + $0x88] sm:$0xff]   ;;  %v1646_v51 = vld [vmem:[#allocation5 + $0x50] sm:$0xff]   ;;  %s1740_s24 = sshll.u32 %s1815_s21, 4  ;;  %s1741_s24 = int_to_ptr.vmem [resolvable:$false] %s1740_s24 }
  0x5d   : > { %1407 = vmatprep.subr.bf16.mxu0 %v1625_v10  ;;  %1483 = vmatprep.subr.bf16.mxu1 %v1812_v0  ;;  %v1647_v52 = vld [vmem:[#allocation5 + $0x10] sm:$0xff]   ;;  %v1649_v54 = vld [vmem:[#allocation5 + $0x58] sm:$0xff]   ;;  %v1652_v57 = vld [vmem:[#allocation5 + $0x60] sm:$0xff]   ;;  %p1738_p2 = pnand %p1737_p10, %p2210_p1  ;;  %s1742_s26 = scalar_lea.vmem %s1741_s24, 512 }
  0x5e   : > { %643 = vmatprep.mubr.bf16.mxu0 %v410_v35  ;;  %v1648_v53 = vld [vmem:[#allocation5 + $0x90] sm:$0xff]   ;;  %v1650_v55 = vld [vmem:[#allocation5 + $0x18] sm:$0xff]   ;;  %v1653_v58 = vld [vmem:[#allocation5 + $0x20] sm:$0xff]   ;;  %p1743_p4 = scmp.lt.s32.totalorder %s2135_s25, %s1741_s24  ;;  %p1744_p7 = scmp.lt.s32.totalorder %s1742_s26, %s1736_s18 }
  0x5f   : > { %v1651_v56 = vld [vmem:[#allocation5 + $0x98] sm:$0xff]   ;;  %v1654_v59 = vld [vmem:[#allocation5 + $0xa0] sm:$0xff]   ;;  %v1655_v60 = vld [vmem:[#allocation5 + $0x68] sm:$0xff]   ;;  %p1739_p3 = pneg %p1738_p2 }
  0x60   : > { %1408 = vmatpush3.bf16.msra.mxu0 %v1626_v11  ;;  %1484 = vmatpush3.bf16.msra.mxu1 %v1627_v13  ;;  %v1656_v61 = vld [vmem:[#allocation5 + $0x28] sm:$0xff]   ;;  %v1658_v63 = vld [vmem:[#allocation5 + $0x70] sm:$0xff]   ;;  %v1661_v3 = vld [vmem:[#allocation5 + $0x78] sm:$0xff]   ;;  %p1745_p8 = por %p1744_p7, %p1743_p4 }
  0x61   : > { %1409 = vmatprep.subr.bf16.mxu0 %v1628_v14  ;;  %1485 = vmatprep.subr.bf16.mxu1 %v1812_v0  ;;  %v1657_v62 = vld [vmem:[#allocation5 + $0xa8] sm:$0xff]   ;;  %v1659_v1 = vld [vmem:[#allocation5 + $0x30] sm:$0xff]   ;;  %v1662_v4 = vld [vmem:[#allocation5 + $0x38] sm:$0xff]  }
  0x62   : > { %v1660_v2 = vld [vmem:[#allocation5 + $0xb0] sm:$0xff]   ;;  %v1663_v5 = vld [vmem:[#allocation5 + $0xb8] sm:$0xff]   ;;  %v1312_v8 = vld [vmem:[%s2180_s2] ss:$0 sm:$0xff]  ;;  %p1746_p11 = pnand %p1745_p8, %p1739_p3 }
  0x63   : > { %v1664_v38 = vld [vmem:[%s2183_s5] sm:$0xff]   ;;  %v1665_v41 = vld [vmem:[%s2183_s5 + $0x8] sm:$0xff]   ;;  %v1666_v36 = vld [vmem:[%s2183_s5 + $0x10] sm:$0xff]  }
  0x64   : > { %1410 = vmatpush3.bf16.msra.mxu0 %v1629_v15  ;;  %1486 = vmatpush3.bf16.msra.mxu1 %v1630_v17  ;;  %v1668_v43 = vld [vmem:[%s2183_s5 + $0x20] sm:$0xff]  }
  0x65   : > { %1411 = vmatprep.subr.bf16.mxu0 %v1631_v18  ;;  %1487 = vmatprep.subr.bf16.mxu1 %v1812_v0 }
  0x68   : > { %1412 = vmatpush3.bf16.msra.mxu0 %v1632_v19  ;;  %1488 = vmatpush3.bf16.msra.mxu1 %v1633_v21 }
  0x69   : > { %1413 = vmatprep.subr.bf16.mxu0 %v1634_v23  ;;  %1489 = vmatprep.subr.bf16.mxu1 %v1812_v0 }
  0x6c   : > { %1414 = vmatpush3.bf16.msra.mxu0 %v1635_v24  ;;  %1490 = vmatpush3.bf16.msra.mxu1 %v1636_v25 }
  0x6d   : > { %1415 = vmatprep.subr.bf16.mxu0 %v1637_v26  ;;  %1491 = vmatprep.subr.bf16.mxu1 %v1812_v0 }
  0x70   : > { %1416 = vmatpush3.bf16.msra.mxu0 %v1638_v34  ;;  %1492 = vmatpush3.bf16.msra.mxu1 %v1639_v37 }
  0x71   : > { %1432 = vmatprep.subr.bf16.mxu0 %v1640_v42  ;;  %1497 = vmatprep.subr.bf16.mxu1 %v1812_v0  ;;  %v1667_v42 = vld [vmem:[%s2183_s5 + $0x18] sm:$0xff]  }
  0x73   : > { %1340 = vmatmul.mubr.msk.bf16.vlgmr.msra.gmra.mrb[0].mxu0 %vm2018_vm5, %v1339_v44  ;;  %1494 = vmatmul.mubr.msk.bf16.vlgmr.msra.gmra.mrb[0].mxu1 %vm2031_vm7, %v1343_v46  ;;  %v1669_v44 = vld [vmem:[%s2183_s5 + $0x28] sm:$0xff]   ;;  %v1671_v46 = vld [vmem:[%s2183_s5 + $0x38] sm:$0xff]  }
  0x74   : > { %1433 = vmatpush3.bf16.msra.mxu0 %v1641_v45  ;;  %1498 = vmatpush3.bf16.msra.mxu1 %v1642_v47  ;;  %v1670_v45 = vld [vmem:[%s2183_s5 + $0x30] sm:$0xff]   ;;  %v1672_v47 = vld [vmem:[%s2185_s7] sm:$0xff]  }
  0x75   : > { %1434 = vmatprep.subr.bf16.mxu0 %v1643_v48  ;;  %1499 = vmatprep.subr.bf16.mxu1 %v1812_v0  ;;  %v1673_v48 = vld [vmem:[%s2185_s7 + $0x8] sm:$0xff]  }
  0x76   : > { %1513 = vmatprep.mubr.msk.bf16.mxu1 %vm1813_vm0, %v1812_v0 }
  0x78   : > { %1435 = vmatpush3.bf16.msra.mxu0 %v1644_v49  ;;  %1500 = vmatpush3.bf16.msra.mxu1 %v1645_v50 }
  0x79   : > { %1436 = vmatprep.subr.bf16.mxu0 %v1646_v51  ;;  %1501 = vmatprep.subr.bf16.mxu1 %v1812_v0  ;;  %v1345_v51 = vld [vmem:[%s2182_s4] ss:$0 sm:$0xff] }
  0x7c   : > { %1437 = vmatpush3.bf16.msra.mxu0 %v1647_v52  ;;  %1502 = vmatpush3.bf16.msra.mxu1 %v1648_v53 }
  0x7d   : > { %1438 = vmatprep.subr.bf16.mxu0 %v1649_v54  ;;  %1503 = vmatprep.subr.bf16.mxu1 %v1812_v0 }
  0x80   : > { %1439 = vmatpush3.bf16.msra.mxu0 %v1650_v55  ;;  %1504 = vmatpush3.bf16.msra.mxu1 %v1651_v56 }
  0x81   : > { %1505 = vmatprep.subr.bf16.mxu1 %v1812_v0  ;;  %1440 = vmatprep.subr.bf16.mxu0 %v1652_v57 }
  0x84   : > { %1441 = vmatpush3.bf16.msra.mxu0 %v1653_v58  ;;  %1506 = vmatpush3.bf16.msra.mxu1 %v1654_v59 }
  0x85   : > { %1507 = vmatprep.subr.bf16.mxu1 %v1812_v0  ;;  %1442 = vmatprep.subr.bf16.mxu0 %v1655_v60 }
  0x88   : > { %1443 = vmatpush3.bf16.msra.mxu0 %v1656_v61  ;;  %1508 = vmatpush3.bf16.msra.mxu1 %v1657_v62 }
  0x89   : > { %1509 = vmatprep.subr.bf16.mxu1 %v1812_v0  ;;  %1444 = vmatprep.subr.bf16.mxu0 %v1658_v63 }
  0x8c   : > { %1445 = vmatpush3.bf16.msra.mxu0 %v1659_v1  ;;  %1510 = vmatpush3.bf16.msra.mxu1 %v1660_v2 }
  0x8d   : > { %1511 = vmatprep.subr.bf16.mxu1 %v1812_v0  ;;  %1446 = vmatprep.subr.bf16.mxu0 %v1661_v3 }
  0x90   : > { %1447 = vmatpush3.bf16.msra.mxu0 %v1662_v4  ;;  %1512 = vmatpush3.bf16.msra.mxu1 %v1663_v5 }
  0x91   : > { %1517 = vmatprep.subr.bf16.mxu0 %v1812_v0  ;;  %1537 = vmatprep.subr.bf16.mxu1 %v1812_v0 }
 0x146   : > { %v1417_v6 = vpop.f32.mrb[0].mxu0  ;;  %v686_v9 = vpop.f32.mrb[0].mxu1 }
 0x147   : > { %v1418_v7 = vpop.f32.mrb[1].mxu0  ;;  %v1495_v12 = vpop.f32.mrb[1].mxu1 }
 0x148   : > { %v1419_v10 = vadd.f32 %v1418_v7, %v1417_v6  ;;  %v1420_v11 = vpop.f32.mrb[2].mxu0  ;;  %v689_v14 = vpop.f32.mrb[2].mxu1 }
 0x149   : > { %v1421_v13 = vpop.f32.mrb[3].mxu0  ;;  %v1496_v18 = vpop.f32.mrb[3].mxu1 }
 0x14a   : > { %v646_v15 = vadd.f32 %v1419_v10, %v1312_v8  ;;  %v1422_v17 = vadd.f32 %v1421_v13, %v1420_v11  ;;  %v1675_v10 = vld [vmem:[%s2185_s7 + $0x18] sm:$0xff]   ;;  %v1017_v11 = vld [vmem:[%s2184_s6] sm:$0x1] }
 0x14c   : > { %v687_v19 = vadd.f32 %v686_v9, %v646_v15  ;;  %v649_v20 = vadd.f32 %v1422_v17, %v1312_v8  ;;  %v1674_v9 = vld [vmem:[%s2185_s7 + $0x10] sm:$0xff]  }
 0x14e   : > { %v693_v21 = vmul.f32 0.001, %v687_v19  ;;  %v690_v22 = vadd.f32 %v689_v14, %v649_v20 }
 0x150   : > { %v695_v23 = vmax.f32 %v687_v19, %v693_v21  ;;  %v694_v24 = vmul.f32 0.001, %v690_v22 }
 0x152   : > { %v696_v25 = vmax.f32 %v690_v22, %v694_v24  ;;  %v697_v26 = vrot.slane %v695_v23, 7  ;;  %v703_v27 = vrot.slane %v695_v23, 1 }
 0x154   : > { %v698_v30 = vrot.slane %v696_v25, 7  ;;  %v704_v31 = vrot.slane %v696_v25, 1  ;;  %v710_v32 = vpack.c.bf16 %v696_v25, %v695_v23 }
 0x156   : > { %v699_v33 = vsel %vm397_vm1, %v697_v26, %v698_v30  ;;  %v700_v34 = vsel %vm397_vm1, %v698_v30, %v697_v26  ;;  %v705_v35 = vsel %vm404_vm3, %v703_v27, %v704_v31  ;;  %v706_v37 = vsel %vm404_vm3, %v704_v31, %v703_v27  ;;  %943 = vmatprep.mubr.bf16.mxu0 %v710_v32 }
 0x157   : > { %v1372_v39 = vpack.c.bf16 %v699_v33, %v700_v34  ;;  %v1376_v40 = vpack.c.bf16 %v706_v37, %v705_v35  ;;  %v1193_v30 = vsub.s32 0, %v1996_v16 }
 0x159   : > { %1373 = vmatmul.mubr.msk.bf16.vlgmr.msra.gmra.mrb[4].mxu0 %vm2018_vm5, %v1372_v39  ;;  %1514 = vmatmul.mubr.msk.bf16.vlgmr.msra.gmra.mrb[4].mxu1 %vm2031_vm7, %v1376_v40 }
 0x15a   : > { %1518 = vmatpush3.bf16.msra.mxu0 %v1664_v38  ;;  %1533 = vmatprep.mubr.msk.bf16.mxu0 %vm1813_vm0, %v1812_v0 }
 0x15b   : > { %1519 = vmatprep.subr.bf16.mxu0 %v1812_v0  ;;  %1545 = vmatprep.mubr.msk.bf16.mxu1 %vm1813_vm0, %v1812_v0 }
 0x15c   : > { %1538 = vmatpush3.bf16.msra.mxu1 %v1672_v47 }
 0x15d   : > { %1539 = vmatprep.subr.bf16.mxu1 %v1812_v0 }
 0x15e   : > { %1520 = vmatpush3.bf16.msra.mxu0 %v1665_v41 }
 0x15f   : > { %1521 = vmatprep.subr.bf16.mxu0 %v1812_v0 }
 0x160   : > { %1540 = vmatpush3.bf16.msra.mxu1 %v1673_v48 }
 0x161   : > { %1541 = vmatprep.subr.bf16.mxu1 %v1812_v0 }
 0x162   : > { %1522 = vmatpush3.bf16.msra.mxu0 %v1666_v36 }
 0x163   : > { %1523 = vmatprep.subr.bf16.mxu0 %v1812_v0 }
 0x164   : > { %1542 = vmatpush3.bf16.msra.mxu1 %v1674_v9 }
 0x165   : > { %1543 = vmatprep.subr.bf16.mxu1 %v1812_v0 }
 0x166   : > { %1524 = vmatpush3.bf16.msra.mxu0 %v1667_v42 }
 0x167   : > { %1525 = vmatprep.subr.bf16.mxu0 %v1812_v0 }
 0x168   : > { %1544 = vmatpush3.bf16.msra.mxu1 %v1675_v10 }
 0x16a   : > { %1526 = vmatpush3.bf16.msra.mxu0 %v1668_v43 }
 0x16b   : > { %1527 = vmatprep.subr.bf16.mxu0 %v1812_v0 }
 0x16e   : > { %1528 = vmatpush3.bf16.msra.mxu0 %v1669_v44 }
 0x16f   : > { %1529 = vmatprep.subr.bf16.mxu0 %v1812_v0 }
 0x172   : > { %1530 = vmatpush3.bf16.msra.mxu0 %v1670_v45 }
 0x173   : > { %1531 = vmatprep.subr.bf16.mxu0 %v1812_v0  ;;  %v1116_v0 = vld [vmem:[%s2186_s8] sm:$0x1] }
 0x176   : > { %1532 = vmatpush3.bf16.msra.mxu0 %v1671_v46 }
 0x22c   : > { %v1448_v49 = vpop.f32.mrb[4].mxu0  ;;  %v986_v50 = vpop.f32.mrb[4].mxu1 }
 0x22d   : > { %v1449_v52 = vpop.f32.mrb[5].mxu0  ;;  %v1515_v53 = vpop.f32.mrb[5].mxu1 }
 0x22e   : > { %v1450_v54 = vadd.f32 %v1449_v52, %v1448_v49  ;;  %v1451_v55 = vpop.f32.mrb[6].mxu0  ;;  %v989_v56 = vpop.f32.mrb[6].mxu1 }
 0x22f   : > { %v1452_v57 = vpop.f32.mrb[7].mxu0  ;;  %v1516_v58 = vpop.f32.mrb[7].mxu1 }
 0x230   : > { %v946_v59 = vadd.f32 %v1450_v54, %v1345_v51  ;;  %v1453_v60 = vadd.f32 %v1452_v57, %v1451_v55 }
 0x232   : > { %v987_v61 = vadd.f32 %v986_v50, %v946_v59  ;;  %v949_v62 = vadd.f32 %v1453_v60, %v1345_v51 }
 0x234   : > { %v990_v63 = vadd.f32 %v989_v56, %v949_v62 }
 0x236   : > { %v993_v1 = vadd.f32 %v990_v63, %v987_v61 }
 0x238   : > { %v994_v2 = vrot.slane %v993_v1, 4 }
 0x23a   : > { %v995_v3 = vadd.f32 %v994_v2, %v993_v1 }
 0x23c   : > { %v996_v4 = vrot.slane %v995_v3, 2 }
 0x23e   : > { %v997_v5 = vadd.f32 %v996_v4, %v995_v3 }
 0x240   : > { %v998_v6 = vrot.slane %v997_v5, 1 }
 0x242   : > { %v999_v7 = vadd.f32 %v998_v6, %v997_v5 }
 0x244   : > { %v1000_v8 = vpack.c.bf16 %v999_v7, %v999_v7 }
 0x246   : > { %1534 = vmatmul.mubr.bf16.vlgmr.msra.gmra.mrb[8].mxu0 %v1000_v8 }
 0x319   : > { %v1100_v12 = vpop.f32.mrb[8].mxu0 }
 0x31a   : > { %v1101_v13 = vadd.f32 %v1100_v12, %v1017_v11  ;;  %v1535_v14 = vpop.f32.mrb[9].mxu0 }
 0x31b   : > { %v1103_v15 = vpop.f32.mrb[10].mxu0 }
 0x31c   : > { %v1106_v17 = vmax.f32 %v1101_v13, 0.0  ;;  %v1536_v18 = vpop.f32.mrb[11].mxu0 }
 0x31e   : > { %v1107_v19 = vpack.c.bf16 %v1106_v17, %v1106_v17 }
 0x320   : > { %1546 = vmatmul.mubr.msk.bf16.vlgmr.msra.gmra.mrb[8].mxu1 %vm1141_vm8, %v1107_v19 }
 0x3f3   : > { %v1179_v20 = vpop.f32.mrb[8].mxu1 }
 0x3f4   : > { %v1180_v21 = vadd.f32 %v1179_v20, %v1116_v0  ;;  %v1547_v22 = vpop.f32.mrb[9].mxu1 }
 0x3f5   : > { %v1182_v23 = vpop.f32.mrb[10].mxu1 }
 0x3f6   : > { %v1391_v24 = vmul.f32 -1.442695, %v1180_v21  ;;  %v1548_v25 = vpop.f32.mrb[11].mxu1 }
 0x3f8   : > { %1676 = vpow2.f32 %v1391_v24 }
 0x402   : > { %v1677_v26 = vpop.eup %1676 }
 0x403   : > { %v1188_v27 = vadd.f32 1.0, %v1677_v26 }
 0x405   : > { %1678 = vrcp.f32 %v1188_v27 }
 0x40f   : > { %v1679_v31 = vpop.eup %1678 }
 0x410   : > { %v1194_v32 = vrot.slane %v1679_v31, %v1193_v30 }
 0x412   : > { %v1195_v33 = vmul.f32 %v1194_v32, %v987_v61  ;;  %v1196_v34 = vmul.f32 %v1194_v32, %v990_v63 }
 0x414   : > { %v1197_v35 = vadd.f32 %v1195_v33, %v2005_v28  ;;  %v1198_v37 = vadd.f32 %v1196_v34, %v2007_v29 }
 0x416   : > { %v1199_v16 = vmax.f32 %v1197_v35, 0.0  ;;  %v1200_v38 = vmax.f32 %v1198_v37, 0.0 }
 0x418   : > { %1201 = vst [vmem:[%s355_s22] sm:$0xff] %v1199_v16  ;;  %1202 = vst [vmem:[%s355_s22 + $0x8] sm:$0xff] %v1200_v38 }
 0x419   : > { %1749 = shalt.err (!%p1746_p11)
}
 0x41a   : > { %s1750_s27 = scalar_lea.hbm %s2133_s15, 256  ;;  %s1754_s14 = scalar_lea.hbm %s2187_s9, 512 }
 0x41b   : > { %p1751_p13 = scmp.ne.s32.totalorder %s2133_s15, %s1750_s27  ;;  %p1755_p6 = scmp.lt.u32.totalorder %s2133_s15, %s2187_s9 }
 0x41c   : > { %p1756_p9 = scmp.lt.u32.totalorder %s1754_s14, %s1750_s27  ;;  %p1758_p10 = scmp.lt.u32.totalorder %s1750_s27, %s2133_s15 }
 0x41d   : > { %p1752_p5 = pnand %p1751_p13, %p2210_p1 }
 0x41e   : > { %p1757_p12 = por %p1756_p9, %p1755_p6 }
 0x41f   : > { %p1753_p0 = pneg %p1752_p5 }
 0x420   : > { %p1759_p2 = por %p1758_p10, %p1757_p12 }
 0x422   : > { %p1760_p3 = pnand %p1759_p2, %p1753_p0 }
 0x424   : > { %1763 = shalt.err (!%p1760_p3)
}
 0x425   : > { %s1816_s22 = smov 128   ;;  %s1817_s23 = smov 8  }
 0x426   : > { %1557 = dma.vmem_to_hbm [thread:$0]  (%p2210_p1), %s2135_s25, 256, %s2133_s15, %s2137_s13, %s1816_s22, %s1816_s22, %s1817_s23  }
 0x427 PF: > { %p1574_p4 = scmp.ge.s32.totalorder %s1806_s12, 2  ;;  %s1232_s11 = sand.u32 1, %s1794_s30  }
 0x428   : > { %p2211_p7 = scmp.ne.s32.totalorder %s2198_s20, 0  ;;  %s1233_s18 = scalar_lea.sflag [#allocation4], %s1232_s11 }
 0x42a   : > { %p1567_p8 = pnand %p1574_p4, %p2211_p7 }
 0x42c   : > { %1789 = dma.done.wait (!%p1567_p8), %s1233_s18, 256  }
 0x42d   : > { %1791 = vsyncadd (!%p1567_p8), %s1233_s18, 4294967040  ;;  %s2212_s12 = sld [smem:[#allocation12_spill]]  ;;  %s2213_s21 = sld [smem:[#allocation11_spill]] }
 0x42e   : > { %s2214_s11 = sld [smem:[#allocation13_spill]]  ;;  %s2215_s30 = smov %s1798_s10 }
 0x433   : > { %p21_p11 = scmp.ge.s32.totalorder %s2212_s12, 4   ;;  %s2216_s10 = smov %s2213_s21 }
 0x435   :  { %23 = sbr.rel (!%p21_p11) target bundleno = 5 (0x5), region = 100 }
 0x43c   :  { %1238 = vsyncpa [#allocation3], 1 }
 0x43d   :  { %1240 = vsyncpa [#allocation3 + $0x1], 1 }
 0x43e   :  { %1241 = vsyncpa [#allocation6], 1 }
 0x43f   :  { %1242 = vsyncpa [#allocation4], 1 }
 0x440   :  { %1244 = vsyncpa [#allocation4 + $0x1], 1 }

</bundles_post_ra>
